<compile_context>
chip_gen: v6e
topology: v6e:2x2x1
jax: 0.10.0
libtpu: 0.0.40
codegen_flags: <defaults>
</compile_context>

<pallas_src>
import jax
import jax.numpy as jnp
from jax.experimental import pallas as pl
from jax.experimental.pallas import tpu as pltpu

_LANE = 128     # lane width (last-dim vreg width)
_SUBLANE = 8    # f32 sublane count


def _round_up(n: int, m: int) -> int:
    return ((n + m - 1) // m) * m


def _leaky_relu(x, slope=0.2):
    return jnp.where(x >= 0, x, slope * x)


def dqn_kernel(x_ref, w1_ref, b1_ref, w2_ref, b2_ref, w3_ref, b3_ref, o_ref):
    # x and weights are bf16 (MXU operands), accumulation + elementwise in f32.
    h1 = jnp.dot(x_ref[...], w1_ref[...], preferred_element_type=jnp.float32)
    h1 = _leaky_relu(h1 + b1_ref[...])
    h2 = jnp.dot(h1.astype(jnp.bfloat16), w2_ref[...],
                 preferred_element_type=jnp.float32)
    h2 = _leaky_relu(h2 + b2_ref[...])
    h3 = jnp.dot(h2.astype(jnp.bfloat16), w3_ref[...],
                 preferred_element_type=jnp.float32)
    h3 = _leaky_relu(h3 + b3_ref[...])
    o_ref[...] = h3.astype(o_ref.dtype)


def prepare_dqn_params(params):
    """One-time prep: lane-pad hidden widths, cast weights to bf16.

    Zero padding keeps padded columns exactly zero through LeakyReLU
    (lrelu(0) = 0), so real columns are bit-identical to the unpadded compute.
    The final layer's output width is left at the real `outputs` (block last
    dim == full array dim is legal), so output stores are real-width.
    """
    w1, b1, w2, b2, w3, b3 = (params[k] for k in ("w1", "b1", "w2", "b2", "w3", "b3"))
    inputs = w1.shape[0]
    h1p = _round_up(w1.shape[1], _LANE)
    h2p = _round_up(w2.shape[1], _LANE)
    outputs = w3.shape[1]

    def pad2(a, rows, cols):
        return jnp.pad(a, ((0, rows - a.shape[0]), (0, cols - a.shape[1])))

    return {
        "w1": pad2(w1, inputs, h1p).astype(jnp.bfloat16),
        "w2": pad2(w2, h1p, h2p).astype(jnp.bfloat16),
        "w3": pad2(w3, h2p, outputs).astype(jnp.bfloat16),
        "b1": pad2(b1.reshape(1, -1), 1, h1p),      # biases stay f32
        "b2": pad2(b2.reshape(1, -1), 1, h2p),
        "b3": b3.reshape(1, -1),
    }


def dqn_forward(x, prepared, *, tile_b=1024):
    """x: (B, inputs).  prepared: output of prepare_dqn_params (called once)."""
    w1p, b1p, w2p, b2p, w3p, b3p = (
        prepared[k] for k in ("w1", "b1", "w2", "b2", "w3", "b3"))
    B, inputs = x.shape
    assert w1p.shape[0] == inputs
    h1p, h2p, outputs = w1p.shape[1], w2p.shape[1], w3p.shape[1]

    # bf16 x for DMA (ideally the producer emits bf16 so this cast fuses away).
    if x.dtype != jnp.bfloat16:
        x = x.astype(jnp.bfloat16)

    # Batch tile: multiple of 8 sublanes, capped at tile_b; tail tile handled
    # by cdiv grid (partial-block output stores are masked by Pallas).
    tb = _round_up(min(tile_b, _round_up(B, _SUBLANE)), _SUBLANE)
    grid = (pl.cdiv(B, tb),)

    x_spec = pl.BlockSpec((tb, inputs), lambda i: (i, 0))
    o_spec = pl.BlockSpec((tb, outputs), lambda i: (i, 0))
    resident = lambda a: pl.BlockSpec(a.shape, lambda i: (0, 0))  # VMEM-resident

    flops = 2 * B * (inputs * h1p + h1p * h2p + h2p * outputs)
    bytes_accessed = (
        x.size * 2
        + (w1p.size + w2p.size + w3p.size) * 2
        + (b1p.size + b2p.size + b3p.size) * 4
        + B * outputs * 4
    )

    # Per-step VMEM at tb<=2048 with 128-wide hidden features is a few MiB,
    # comfortably under the 32 MiB scoped default on v5e/v6e/v7x; raise
    # vmem_limit_bytes only if tile_b is pushed far beyond that.
    out = pl.pallas_call(
        dqn_kernel,
        out_shape=jax.ShapeDtypeStruct((B, outputs), jnp.float32),
        grid=grid,
        in_specs=[x_spec, resident(w1p), resident(b1p), resident(w2p),
                  resident(b2p), resident(w3p), resident(b3p)],
        out_specs=o_spec,
        compiler_params=pltpu.CompilerParams(
            dimension_semantics=("parallel",)),
        cost_estimate=pl.CostEstimate(
            flops=flops, transcendentals=0, bytes_accessed=bytes_accessed),
    )(x, w1p, b1p, w2p, b2p, w3p, b3p)

    return out


def init_dqn_params(key, inputs, hidden1, hidden2, outputs):
    """Mimics nn.Linear default init (U[-1/sqrt(fan_in), 1/sqrt(fan_in)]).

    Weights stored as (in_features, out_features); biases as (out_features,).
    """
    ks = jax.random.split(key, 6)

    def lin(kw, kb, fan_in, fan_out):
        bound = 1.0 / jnp.sqrt(jnp.float32(fan_in))
        w = jax.random.uniform(kw, (fan_in, fan_out), jnp.float32, -bound, bound)
        b = jax.random.uniform(kb, (fan_out,), jnp.float32, -bound, bound)
        return w, b

    w1, b1 = lin(ks[0], ks[1], inputs, hidden1)
    w2, b2 = lin(ks[2], ks[3], hidden1, hidden2)
    w3, b3 = lin(ks[4], ks[5], hidden2, outputs)
    return {"w1": w1, "b1": b1, "w2": w2, "b2": b2, "w3": w3, "b3": b3}


def dqn_reference(x, params):
    """Pure-JAX f32 reference of the PyTorch forward (LeakyReLU after every layer)."""
    h = _leaky_relu(x @ params["w1"] + params["b1"])
    h = _leaky_relu(h @ params["w2"] + params["b2"])
    h = _leaky_relu(h @ params["w3"] + params["b3"])
    return h


if __name__ == "__main__":
    key = jax.random.PRNGKey(0)
    k_param, k_x = jax.random.split(key)

    B, inputs, hidden1, hidden2, outputs = 8, 32, 64, 64, 16
    params = init_dqn_params(k_param, inputs, hidden1, hidden2, outputs)
    prepared = prepare_dqn_params(params)   # one-time pad + bf16 cast
    x = jax.random.normal(k_x, (B, inputs), dtype=jnp.float32)

    out = jax.block_until_ready(dqn_forward(x, prepared))
    ref = dqn_reference(x, params)

    assert out.shape == (B, outputs)
    # bf16 MXU operands (incl. x) + f32 accumulation -> compare to the f32
    # reference with a bf16-appropriate tolerance.
    max_err = float(jnp.max(jnp.abs(out - ref)))
    assert jnp.allclose(out, ref, atol=5e-2, rtol=5e-2), max_err

    print("KERNEL_OK")
</pallas_src>

<mosaic_0001>
module attributes {stable_mosaic.version = 11 : i64} {
  func.func @dqn_kernel(%arg0: i32, %arg1: memref<8x32xbf16, #tpu.memory_space<vmem>>, %arg2: memref<32x128xbf16, #tpu.memory_space<vmem>>, %arg3: memref<1x128xf32, #tpu.memory_space<vmem>>, %arg4: memref<128x128xbf16, #tpu.memory_space<vmem>>, %arg5: memref<1x128xf32, #tpu.memory_space<vmem>>, %arg6: memref<128x16xbf16, #tpu.memory_space<vmem>>, %arg7: memref<1x16xf32, #tpu.memory_space<vmem>>, %arg8: memref<8x16xf32, #tpu.memory_space<vmem>>) attributes {dimension_semantics = [#tpu.dimension_semantics<parallel>], iteration_bounds = array<i64: 1>, scalar_prefetch = 0 : i64, scratch_operands = 0 : i64, tpu.core_type = #tpu.core_type<tc>, window_params = [{transform_indices = @transform_0, window_bounds = array<i64: 8, 32>}, {pipeline_mode = #tpu.pipeline_mode<synchronous>, transform_indices = @transform_1, window_bounds = array<i64: 32, 128>}, {pipeline_mode = #tpu.pipeline_mode<synchronous>, transform_indices = @transform_2, window_bounds = array<i64: 1, 128>}, {pipeline_mode = #tpu.pipeline_mode<synchronous>, transform_indices = @transform_3, window_bounds = array<i64: 128, 128>}, {pipeline_mode = #tpu.pipeline_mode<synchronous>, transform_indices = @transform_4, window_bounds = array<i64: 1, 128>}, {pipeline_mode = #tpu.pipeline_mode<synchronous>, transform_indices = @transform_5, window_bounds = array<i64: 128, 16>}, {pipeline_mode = #tpu.pipeline_mode<synchronous>, transform_indices = @transform_6, window_bounds = array<i64: 1, 16>}, {transform_indices = @transform_7, window_bounds = array<i64: 8, 16>}]} {
    %c0 = arith.constant 0 : index
    %c0_0 = arith.constant 0 : index
    %0 = vector.load %arg1[%c0, %c0_0] : memref<8x32xbf16, #tpu.memory_space<vmem>>, vector<8x32xbf16>
    %c0_1 = arith.constant 0 : index
    %c0_2 = arith.constant 0 : index
    %1 = vector.load %arg2[%c0_1, %c0_2] : memref<32x128xbf16, #tpu.memory_space<vmem>>, vector<32x128xbf16>
    %cst = arith.constant dense<0.000000e+00> : vector<8x128xf32>
    %2 = tpu.matmul %0, %1, %cst {dimension_numbers = #tpu.dot_dimension_numbers<[1], [0], [0], [1], [0, 0, 1, 1], [], []>} : vector<8x32xbf16>, vector<32x128xbf16>, vector<8x128xf32> -> vector<8x128xf32>
    %c0_3 = arith.constant 0 : index
    %c0_4 = arith.constant 0 : index
    %3 = vector.load %arg3[%c0_3, %c0_4] : memref<1x128xf32, #tpu.memory_space<vmem>>, vector<1x128xf32>
    %4 = vector.broadcast %3 : vector<1x128xf32> to vector<8x128xf32>
    %5 = arith.addf %2, %4 : vector<8x128xf32>
    %cst_5 = arith.constant 0.000000e+00 : f32
    %6 = vector.broadcast %cst_5 : f32 to vector<8x128xf32>
    %7 = arith.cmpf oge, %5, %6 : vector<8x128xf32>
    %cst_6 = arith.constant 2.000000e-01 : f32
    %8 = vector.broadcast %cst_6 : f32 to vector<8x128xf32>
    %9 = arith.mulf %8, %5 : vector<8x128xf32>
    %10 = arith.select %7, %5, %9 : vector<8x128xi1>, vector<8x128xf32>
    %11 = arith.truncf %10 : vector<8x128xf32> to vector<8x128xbf16>
    %c0_7 = arith.constant 0 : index
    %c0_8 = arith.constant 0 : index
    %12 = vector.load %arg4[%c0_7, %c0_8] : memref<128x128xbf16, #tpu.memory_space<vmem>>, vector<128x128xbf16>
    %cst_9 = arith.constant dense<0.000000e+00> : vector<8x128xf32>
    %13 = tpu.matmul %11, %12, %cst_9 {dimension_numbers = #tpu.dot_dimension_numbers<[1], [0], [0], [1], [0, 0, 1, 1], [], []>} : vector<8x128xbf16>, vector<128x128xbf16>, vector<8x128xf32> -> vector<8x128xf32>
    %c0_10 = arith.constant 0 : index
    %c0_11 = arith.constant 0 : index
    %14 = vector.load %arg5[%c0_10, %c0_11] : memref<1x128xf32, #tpu.memory_space<vmem>>, vector<1x128xf32>
    %15 = vector.broadcast %14 : vector<1x128xf32> to vector<8x128xf32>
    %16 = arith.addf %13, %15 : vector<8x128xf32>
    %cst_12 = arith.constant 0.000000e+00 : f32
    %17 = vector.broadcast %cst_12 : f32 to vector<8x128xf32>
    %18 = arith.cmpf oge, %16, %17 : vector<8x128xf32>
    %cst_13 = arith.constant 2.000000e-01 : f32
    %19 = vector.broadcast %cst_13 : f32 to vector<8x128xf32>
    %20 = arith.mulf %19, %16 : vector<8x128xf32>
    %21 = arith.select %18, %16, %20 : vector<8x128xi1>, vector<8x128xf32>
    %22 = arith.truncf %21 : vector<8x128xf32> to vector<8x128xbf16>
    %c0_14 = arith.constant 0 : index
    %c0_15 = arith.constant 0 : index
    %23 = vector.load %arg6[%c0_14, %c0_15] : memref<128x16xbf16, #tpu.memory_space<vmem>>, vector<128x16xbf16>
    %cst_16 = arith.constant dense<0.000000e+00> : vector<8x16xf32>
    %24 = tpu.matmul %22, %23, %cst_16 {dimension_numbers = #tpu.dot_dimension_numbers<[1], [0], [0], [1], [0, 0, 1, 1], [], []>} : vector<8x128xbf16>, vector<128x16xbf16>, vector<8x16xf32> -> vector<8x16xf32>
    %c0_17 = arith.constant 0 : index
    %c0_18 = arith.constant 0 : index
    %25 = vector.load %arg7[%c0_17, %c0_18] : memref<1x16xf32, #tpu.memory_space<vmem>>, vector<1x16xf32>
    %26 = vector.broadcast %25 : vector<1x16xf32> to vector<8x16xf32>
    %27 = arith.addf %24, %26 : vector<8x16xf32>
    %cst_19 = arith.constant 0.000000e+00 : f32
    %28 = vector.broadcast %cst_19 : f32 to vector<8x16xf32>
    %29 = arith.cmpf oge, %27, %28 : vector<8x16xf32>
    %cst_20 = arith.constant 2.000000e-01 : f32
    %30 = vector.broadcast %cst_20 : f32 to vector<8x16xf32>
    %31 = arith.mulf %30, %27 : vector<8x16xf32>
    %32 = arith.select %29, %27, %31 : vector<8x16xi1>, vector<8x16xf32>
    %c0_21 = arith.constant 0 : index
    %c0_22 = arith.constant 0 : index
    %33 = vector.load %arg8[%c0_21, %c0_22] : memref<8x16xf32, #tpu.memory_space<vmem>>, vector<8x16xf32>
    tpu.vector_store %arg8[%c0_21, %c0_22], %32 {strides = array<i32>} : memref<8x16xf32, #tpu.memory_space<vmem>>, vector<8x16xf32>,
    return
  }
  func.func @transform_0(%arg0: i32) -> (i32, i32) {
    %c0_i32 = arith.constant 0 : i32
    %c0_i32_0 = arith.constant 0 : i32
    return %arg0, %c0_i32 : i32, i32
  }
  func.func @transform_1(%arg0: i32) -> (i32, i32) {
    %c0_i32 = arith.constant 0 : i32
    %c0_i32_0 = arith.constant 0 : i32
    %c0_i32_1 = arith.constant 0 : i32
    return %c0_i32, %c0_i32_0 : i32, i32
  }
  func.func @transform_2(%arg0: i32) -> (i32, i32) {
    %c0_i32 = arith.constant 0 : i32
    %c0_i32_0 = arith.constant 0 : i32
    %c0_i32_1 = arith.constant 0 : i32
    return %c0_i32, %c0_i32_0 : i32, i32
  }
  func.func @transform_3(%arg0: i32) -> (i32, i32) {
    %c0_i32 = arith.constant 0 : i32
    %c0_i32_0 = arith.constant 0 : i32
    %c0_i32_1 = arith.constant 0 : i32
    return %c0_i32, %c0_i32_0 : i32, i32
  }
  func.func @transform_4(%arg0: i32) -> (i32, i32) {
    %c0_i32 = arith.constant 0 : i32
    %c0_i32_0 = arith.constant 0 : i32
    %c0_i32_1 = arith.constant 0 : i32
    return %c0_i32, %c0_i32_0 : i32, i32
  }
  func.func @transform_5(%arg0: i32) -> (i32, i32) {
    %c0_i32 = arith.constant 0 : i32
    %c0_i32_0 = arith.constant 0 : i32
    %c0_i32_1 = arith.constant 0 : i32
    return %c0_i32, %c0_i32_0 : i32, i32
  }
  func.func @transform_6(%arg0: i32) -> (i32, i32) {
    %c0_i32 = arith.constant 0 : i32
    %c0_i32_0 = arith.constant 0 : i32
    %c0_i32_1 = arith.constant 0 : i32
    return %c0_i32, %c0_i32_0 : i32, i32
  }
  func.func @transform_7(%arg0: i32) -> (i32, i32) {
    %c0_i32 = arith.constant 0 : i32
    %c0_i32_0 = arith.constant 0 : i32
    return %arg0, %c0_i32 : i32, i32
  }
}

</mosaic_0001>

<bundles_post_ra>
// kernel: tpu_custom_call.1
= control target key start
LH: loop header
LB: loop body
LE: loop exit
PB: predicated region body
PF: predicated region fallthrough
CT: control target
= control target key end

     0   :  { %12 = vsyncpa [#allocation3], 0  ;;  %s655_s0 = inlined_call_operand.vmem [shape: bf16[8,32], index: 0, kind: input, shape index: {}]   ;;  %s656_s1 = inlined_call_operand.hbm [shape: bf16[32,128], index: 1, kind: input, shape index: {}]   ;;  %s657_s2 = inlined_call_operand.vmem [shape: f32[1,128], index: 2, kind: input, shape index: {}]   ;;  %s658_s3 = inlined_call_operand.vmem [shape: bf16[128,128], index: 3, kind: input, shape index: {}]   ;;  %s659_s4 = inlined_call_operand.vmem [shape: f32[1,128], index: 4, kind: input, shape index: {}]   ;;  %s660_s5 = inlined_call_operand.vmem [shape: bf16[128,16], index: 5, kind: input, shape index: {}]   ;;  %s661_s6 = inlined_call_operand.vmem [shape: f32[1,16], index: 6, kind: input, shape index: {}]   ;;  %s662_s7 = inlined_call_operand.hbm [shape: f32[8,16], index: 7, kind: output, shape index: {}]  }
   0x1   :  { %13 = vsyncpa [#allocation4], 0  ;;  %s519_s24 = smov [#allocation2]  }
   0x2   :  { %s21_s25 = sshll.u32 %s519_s24, 4  ;;  %s22_s25 = int_to_ptr.vmem [resolvable:$true] %s21_s25 }
   0x3   :  { %s483_s26 = scalar_lea.vmem %s22_s25, 256  ;;  %p488_p1 = scmp.lt.s32.totalorder %s22_s25, %s22_s25 }
   0x4   :  { %p484_p0 = scmp.ne.s32.totalorder %s22_s25, %s483_s26  ;;  %p489_p2 = scmp.lt.s32.totalorder %s483_s26, %s483_s26 }
   0x6   :  { %p490_p3 = por %p489_p2, %p488_p1 }
   0x8   :  { %p491_p4 = pnand %p490_p3, %p484_p0 }
   0xa   :  { %494 = shalt.err (!%p491_p4)
}
   0xb   :  { %s520_s27 = smov 64   ;;  %s521_s28 = smov 4  }
   0xc   :  { %27 = dma.hbm_to_vmem [thread:$0]  %s656_s1, 256, %s22_s25, [#allocation3], %s520_s27, %s520_s27, %s521_s28  }
   0xd   :  { %515 = dma.done.wait [#allocation3], 256  }
   0xe   :  { %516 = vsyncadd [#allocation3], 4294967040  ;;  %v522_v0 = vmov 0.0   ;;  %vm523_vm0 = vmmov 0   ;;  %v457_v1 = vld [vmem:[#allocation2 + $0x8] sm:$0xff]   ;;  %v458_v2 = vld [vmem:[#allocation2] sm:$0xff]  }
   0xf   :  { %403 = vmatprep.subr.bf16.mxu0 %v522_v0  ;;  %407 = vmatprep.mubr.msk.bf16.mxu0 %vm523_vm0, %v522_v0  ;;  %v459_v3 = vld [vmem:[%s658_s3 + $0x38] sm:$0xff]   ;;  %vm66_vm1 = vcmask 261120   ;;  %v460_v4 = vld [vmem:[%s658_s3 + $0x30] sm:$0xff]   ;;  %v42_v5 = vld [vmem:[%s655_s0] sm:$0xf]  ;;  %vm343_vm5 = vcmask 130048  }
  0x10   :  { %411 = vmatprep.subr.bf16.mxu1 %v522_v0  ;;  %427 = vmatprep.mubr.msk.bf16.mxu1 %vm523_vm0, %v522_v0  ;;  %v461_v6 = vld [vmem:[%s658_s3 + $0x28] sm:$0xff]   ;;  %v462_v7 = vld [vmem:[%s658_s3 + $0x20] sm:$0xff]   ;;  %v463_v8 = vld [vmem:[%s658_s3 + $0x18] sm:$0xff]  }
  0x11   :  { %404 = vmatpush3.bf16.msra.mxu0 %v457_v1  ;;  %412 = vmatpush3.bf16.msra.mxu1 %v459_v3  ;;  %v464_v9 = vld [vmem:[%s658_s3 + $0x10] sm:$0xff]   ;;  %v465_v10 = vld [vmem:[%s658_s3 + $0x8] sm:$0xff]   ;;  %v466_v11 = vld [vmem:[%s658_s3] sm:$0xff]  }
  0x12   :  { %405 = vmatprep.subr.bf16.mxu0 %v522_v0  ;;  %413 = vmatprep.subr.bf16.mxu1 %v522_v0  ;;  %v467_v12 = vld [vmem:[%s660_s5 + $0x38] sm:$0xff]   ;;  %v468_v13 = vld [vmem:[%s660_s5 + $0x30] sm:$0xff]   ;;  %v469_v14 = vld [vmem:[%s660_s5 + $0x28] sm:$0xff]  }
  0x13   :  { %v470_v15 = vld [vmem:[%s660_s5 + $0x20] sm:$0xff]   ;;  %v471_v16 = vld [vmem:[%s660_s5 + $0x18] sm:$0xff]   ;;  %v472_v17 = vld [vmem:[%s660_s5 + $0x10] sm:$0xff]  }
  0x14   :  { %v360_v18 = vld [vmem:[%s657_s2] ss:$0 sm:$0xff]  ;;  %v473_v27 = vld [vmem:[%s660_s5 + $0x8] sm:$0xff]  }
  0x15   :  { %406 = vmatpush3.bf16.msra.mxu0 %v458_v2  ;;  %414 = vmatpush3.bf16.msra.mxu1 %v460_v4  ;;  %v474_v28 = vld [vmem:[%s660_s5] sm:$0xff]   ;;  %s524_s5 = smov [#allocation5]  }
  0x16   :  { %431 = vmatprep.subr.bf16.mxu0 %v522_v0  ;;  %415 = vmatprep.subr.bf16.mxu1 %v522_v0  ;;  %v364_v29 = vld [vmem:[%s659_s4] ss:$0 sm:$0xff]  ;;  %s351_s19 = sshll.u32 %s524_s5, 4  ;;  %s352_s19 = int_to_ptr.vmem [resolvable:$true] %s351_s19 }
  0x17   :  { %v373_v38 = vld [vmem:[%s661_s6] ss:$0 sm:$0xff]  ;;  %s495_s4 = scalar_lea.vmem %s352_s19, 128  ;;  %p500_p6 = scmp.lt.s32.totalorder %s352_s19, %s352_s19 }
  0x18   :  { %408 = vmatmul.mubr.msk.bf16.vlgmr.msra.gmra.mxu0 %vm66_vm1, %v42_v5  ;;  %p496_p5 = scmp.ne.s32.totalorder %s352_s19, %s495_s4  ;;  %p501_p7 = scmp.lt.s32.totalorder %s495_s4, %s495_s4 }
  0x19   :  { %447 = vmatprep.mubr.msk.bf16.mxu0 %vm523_vm0, %v522_v0  ;;  %416 = vmatpush3.bf16.msra.mxu1 %v461_v6 }
  0x1a   :  { %417 = vmatprep.subr.bf16.mxu1 %v522_v0  ;;  %432 = vmatpush3.bf16.msra.mxu0 %v467_v12  ;;  %p502_p8 = por %p501_p7, %p500_p6 }
  0x1b   :  { %433 = vmatprep.subr.bf16.mxu0 %v522_v0 }
  0x1c   :  { %p503_p9 = pnand %p502_p8, %p496_p5 }
  0x1d   :  { %418 = vmatpush3.bf16.msra.mxu1 %v462_v7 }
  0x1e   :  { %419 = vmatprep.subr.bf16.mxu1 %v522_v0  ;;  %434 = vmatpush3.bf16.msra.mxu0 %v468_v13 }
  0x1f   :  { %435 = vmatprep.subr.bf16.mxu0 %v522_v0 }
  0x21   :  { %420 = vmatpush3.bf16.msra.mxu1 %v463_v8 }
  0x22   :  { %421 = vmatprep.subr.bf16.mxu1 %v522_v0  ;;  %436 = vmatpush3.bf16.msra.mxu0 %v469_v14 }
  0x23   :  { %437 = vmatprep.subr.bf16.mxu0 %v522_v0 }
  0x25   :  { %422 = vmatpush3.bf16.msra.mxu1 %v464_v9 }
  0x26   :  { %423 = vmatprep.subr.bf16.mxu1 %v522_v0  ;;  %438 = vmatpush3.bf16.msra.mxu0 %v470_v15 }
  0x27   :  { %439 = vmatprep.subr.bf16.mxu0 %v522_v0 }
  0x29   :  { %424 = vmatpush3.bf16.msra.mxu1 %v465_v10 }
  0x2a   :  { %425 = vmatprep.subr.bf16.mxu1 %v522_v0  ;;  %440 = vmatpush3.bf16.msra.mxu0 %v471_v16 }
  0x2b   :  { %441 = vmatprep.subr.bf16.mxu0 %v522_v0 }
  0x2d   :  { %426 = vmatpush3.bf16.msra.mxu1 %v466_v11 }
  0x2e   :  { %442 = vmatpush3.bf16.msra.mxu0 %v472_v17 }
  0x2f   :  { %443 = vmatprep.subr.bf16.mxu0 %v522_v0 }
  0x32   :  { %444 = vmatpush3.bf16.msra.mxu0 %v473_v27 }
  0x33   :  { %445 = vmatprep.subr.bf16.mxu0 %v522_v0 }
  0x36   :  { %446 = vmatpush3.bf16.msra.mxu0 %v474_v28 }
  0xd8   :  { %v104_v19 = vpop.f32.mrf.mxu0 }
  0xd9   :  { %v105_v20 = vadd.f32 %v360_v18, %v104_v19 }
  0xda   :  { %v409_v21 = vpop.f32.mrf.mxu0 }
  0xdb   :  { %vm110_vm2 = vcmp.ge.f32.partialorder %v105_v20, 0.0  ;;  %v111_v22 = vmul.f32 0.2, %v105_v20 }
  0xdc   :  { %v107_v23 = vpop.f32.mrf.mxu0 }
  0xdd   :  { %v112_v24 = vsel %vm110_vm2, %v105_v20, %v111_v22 }
  0xde   :  { %v410_v25 = vpop.f32.mrf.mxu0  ;;  %v113_v26 = vpack.c.bf16 %v112_v24, %v112_v24 }
  0xe0   :  { %428 = vmatmul.mubr.bf16.vlgmr.msra.gmra.mxu1 %v113_v26 }
 0x1a0   :  { %v219_v30 = vpop.f32.mrf.mxu1 }
 0x1a1   :  { %v220_v31 = vadd.f32 %v364_v29, %v219_v30 }
 0x1a2   :  { %v429_v32 = vpop.f32.mrf.mxu1 }
 0x1a3   :  { %vm225_vm3 = vcmp.ge.f32.partialorder %v220_v31, 0.0  ;;  %v226_v33 = vmul.f32 0.2, %v220_v31 }
 0x1a4   :  { %v222_v34 = vpop.f32.mrf.mxu1 }
 0x1a5   :  { %v227_v35 = vsel %vm225_vm3, %v220_v31, %v226_v33 }
 0x1a6   :  { %v228_v36 = vpack.c.bf16 %v227_v35, %v227_v35  ;;  %v430_v37 = vpop.f32.mrf.mxu1 }
 0x1a8   :  { %448 = vmatmul.mubr.bf16.vlgmr.msra.gmra.mxu0 %v228_v36 }
 0x268   :  { %v334_v39 = vpop.f32.mrf.mxu0 }
 0x269   :  { %v335_v40 = vadd.f32 %v373_v38, %v334_v39 }
 0x26a   :  { %v449_v41 = vpop.f32.mrf.mxu0 }
 0x26b   :  { %vm340_vm4 = vcmp.ge.f32.partialorder %v335_v40, 0.0  ;;  %v341_v42 = vmul.f32 0.2, %v335_v40 }
 0x26c   :  { %v337_v43 = vpop.f32.mrf.mxu0 }
 0x26d   :  { %v342_v44 = vsel %vm340_vm4, %v335_v40, %v341_v42 }
 0x26e   :  { %v450_v45 = vpop.f32.mrf.mxu0  ;;  %344 = vst.msk [vmem:[#allocation5] sm:$0xff] %vm343_vm5, %v342_v44 }
 0x26f   :  { %506 = shalt.err (!%p503_p9)
}
 0x270   :  { %354 = dma.vmem_to_hbm [thread:$0]  %s352_s19, 128, %s662_s7, [#allocation4]  }
 0x271   :  { %517 = dma.done.wait [#allocation4], 128  }
 0x272   :  { %518 = vsyncadd [#allocation4], 4294967168 }
 0x273   :  { %358 = vsyncpa [#allocation3], 1 }
 0x274   :  { %359 = vsyncpa [#allocation4], 1 }

</bundles_post_ra>
